<compile_context>
chip_gen: v5e
topology: v5e:2x2
jax: 0.10.0
libtpu: 0.0.40
codegen_flags: <defaults>
</compile_context>

<pallas_src>
import functools
import numpy as np
import jax
import jax.numpy as jnp
from jax.experimental import pallas as pl
from jax.experimental.pallas import tpu as pltpu

SEM_DIM = 512     # semantic projection width (fixed by the module)
LANE = 128
SUBLANE = 8
TM_MAX = 512      # row-tile cap
TK_MAX = 2048     # reduction-tile cap


def _round_up(x, m):
    return (x + m - 1) // m * m


def _aux_kernel_single(x_ref, w_ref, b_ref, o_ref):
    """Single-pass body (whole reduction in one K block).

    x_ref : (TM, D_pad)      bf16 activation tile
    w_ref : (D_pad, C_pad)   bf16 fused weights (W.T @ S.T), resident
    b_ref : (1, C_pad)       f32  fused bias (b @ S.T), resident
    o_ref : (TM, C_pad)      f32  aux class scores
    """
    o_ref[...] = jnp.dot(x_ref[...], w_ref[...],
                         preferred_element_type=jnp.float32) + b_ref[...]


def _aux_kernel_ksplit(x_ref, w_ref, b_ref, o_ref):
    """K-split fallback for very large D: accumulate into the resident
    output block (no scratch accumulator)."""
    k = pl.program_id(1)

    @pl.when(k == 0)
    def _():
        o_ref[...] = jnp.broadcast_to(b_ref[...], o_ref.shape)

    o_ref[...] += jnp.dot(x_ref[...], w_ref[...],
                          preferred_element_type=jnp.float32)


def prepare_aux_params(w, b, sv):
    """One-time parameter prep: fuse the two linear maps, pad, cast.

    w  : (SEM, D)  project.weight
    b  : (SEM,)    project.bias
    sv : (C, SEM)  L2-normalized semantic vectors
    Returns:
      w_fused : (D_pad, C_pad) bf16 = pad(W.T @ S.T)   (fused in f32 first)
      b_fused : (1, C_pad)     f32  = pad(b @ S.T)
    """
    sem, d = w.shape
    c, sem2 = sv.shape
    assert sem == SEM_DIM and sem2 == SEM_DIM

    d_pad = _round_up(d, LANE)
    if d_pad > TK_MAX:
        d_pad = _round_up(d, TK_MAX)
    c_pad = _round_up(max(c, LANE), LANE)

    # Fuse in f32 (single rounding to bf16 afterwards).
    w_fused = jnp.dot(w.T.astype(jnp.float32), sv.T.astype(jnp.float32),
                      preferred_element_type=jnp.float32)           # (D, C)
    b_fused = jnp.dot(b.astype(jnp.float32).reshape(1, sem),
                      sv.T.astype(jnp.float32),
                      preferred_element_type=jnp.float32)            # (1, C)

    w_p = jnp.zeros((d_pad, c_pad), jnp.bfloat16).at[:d, :c].set(
        w_fused.astype(jnp.bfloat16))
    b_p = jnp.zeros((1, c_pad), jnp.float32).at[:, :c].set(b_fused)
    return w_p, b_p


@functools.partial(jax.jit, static_argnames=("num_classes",))
def aux_fast_rcnn_output_layers(x, w_fused, b_fused, *, num_classes):
    """x: (N, ...) -> (N, num_classes) aux class scores."""
    if x.ndim > 2:
        x = x.reshape(x.shape[0], -1)          # torch.flatten(x, start_dim=1)
    n, d = x.shape
    d_pad, c_pad = w_fused.shape
    assert d <= d_pad and c_pad % LANE == 0 and num_classes <= c_pad
    assert b_fused.shape == (1, c_pad)

    # Tile sizing. Minimal row padding for small N; TM capped at 512 so
    # large N still yields >= 2 row tiles (keeps both v7x TCs busy).
    tm = min(TM_MAX, _round_up(n, SUBLANE))
    n_pad = _round_up(n, tm)
    tk = min(TK_MAX, d_pad)
    assert d_pad % tk == 0, "w_fused must come from prepare_aux_params()"

    # Pad + cast activations (zero rows/cols contribute nothing).
    xb = x.astype(jnp.bfloat16)
    if (n_pad, d_pad) != (n, d):
        xb = jnp.pad(xb, ((0, n_pad - n), (0, d_pad - d)))

    grid_m = n_pad // tm
    grid_k = d_pad // tk

    cost = pl.CostEstimate(
        flops=2 * n_pad * d_pad * c_pad,
        transcendentals=0,
        bytes_accessed=(xb.size * 2                                  # x once
                        + grid_m * (w_fused.size * 2 + b_fused.size * 4)
                        + n_pad * c_pad * 4),                        # out once
    )

    if grid_k == 1:
        out = pl.pallas_call(
            _aux_kernel_single,
            out_shape=jax.ShapeDtypeStruct((n_pad, c_pad), jnp.float32),
            grid=(grid_m,),
            in_specs=[
                pl.BlockSpec((tm, d_pad), lambda i: (i, 0)),       # x rows
                pl.BlockSpec((d_pad, c_pad), lambda i: (0, 0)),    # W resident
                pl.BlockSpec((1, c_pad), lambda i: (0, 0)),        # b resident
            ],
            out_specs=pl.BlockSpec((tm, c_pad), lambda i: (i, 0)),
            compiler_params=pltpu.CompilerParams(
                dimension_semantics=("parallel",)),
            cost_estimate=cost,
        )(xb, w_fused, b_fused)
    else:
        out = pl.pallas_call(
            _aux_kernel_ksplit,
            out_shape=jax.ShapeDtypeStruct((n_pad, c_pad), jnp.float32),
            grid=(grid_m, grid_k),
            in_specs=[
                pl.BlockSpec((tm, tk), lambda i, k: (i, k)),       # x rows+K
                pl.BlockSpec((tk, c_pad), lambda i, k: (k, 0)),    # W along K
                pl.BlockSpec((1, c_pad), lambda i, k: (0, 0)),     # b resident
            ],
            out_specs=pl.BlockSpec((tm, c_pad), lambda i, k: (i, 0)),
            compiler_params=pltpu.CompilerParams(
                dimension_semantics=("parallel", "arbitrary")),
            cost_estimate=cost,
        )(xb, w_fused, b_fused)

    return out[:n, :num_classes]


def make_params(key, input_size, num_classes, semantic_dim=SEM_DIM):
    """Deterministic synthetic parameters matching the module's __init__."""
    k_w, k_s = jax.random.split(key)
    # nn.init.normal_(self.project.weight, std=0.001); bias = 0
    w = jax.random.normal(k_w, (semantic_dim, input_size), jnp.float32) * 0.001
    b = jnp.zeros((semantic_dim,), jnp.float32)
    # get_semantic_vectors: L2-normalized per-class text features.
    # TODO(synk): real CLIP text embeddings are loaded from disk; synthesized here.
    sv = jax.random.normal(k_s, (num_classes, semantic_dim), jnp.float32)
    norm = jnp.linalg.norm(sv, ord=2, axis=1, keepdims=True)
    sv = sv / (norm + 1e-05)
    return w, b, sv


if __name__ == "__main__":
    key = jax.random.PRNGKey(0)
    k_x, k_p = jax.random.split(key)

    N, C_in, H, W_sp = 2, 4, 16, 16          # pooled ROI features, NCHW
    input_size = C_in * H * W_sp             # 1024 after flatten
    num_classes = 20

    x = jax.random.normal(k_x, (N, C_in, H, W_sp), jnp.float32)
    w, b, sv = make_params(k_p, input_size, num_classes)

    # One-time parameter prep (fuse / pad / bf16 cast).
    w_fused, b_fused = prepare_aux_params(w, b, sv)

    out = aux_fast_rcnn_output_layers(x, w_fused, b_fused,
                                      num_classes=num_classes)
    out = jax.block_until_ready(out)
    assert out.shape == (N, num_classes)

    # Pure-f32 reference of the original two-stage module (catches drift from
    # the bf16 fused-weight path, per review).
    x_flat = x.reshape(N, -1)
    proj_ref = jnp.dot(x_flat, w.T, preferred_element_type=jnp.float32) + b
    ref = jnp.dot(proj_ref, sv.T, preferred_element_type=jnp.float32)
    np.testing.assert_allclose(np.asarray(out), np.asarray(ref),
                               rtol=2e-2, atol=2e-3)
    print("KERNEL_OK")
</pallas_src>

<mosaic_0001>
module attributes {stable_mosaic.version = 11 : i64} {
  func.func @_aux_kernel_single(%arg0: i32, %arg1: memref<8x1024xbf16, #tpu.memory_space<vmem>>, %arg2: memref<1024x128xbf16, #tpu.memory_space<vmem>>, %arg3: memref<1x128xf32, #tpu.memory_space<vmem>>, %arg4: memref<8x128xf32, #tpu.memory_space<vmem>>) attributes {dimension_semantics = [#tpu.dimension_semantics<parallel>], iteration_bounds = array<i64: 1>, scalar_prefetch = 0 : i64, scratch_operands = 0 : i64, tpu.core_type = #tpu.core_type<tc>, window_params = [{transform_indices = @transform_0, window_bounds = array<i64: 8, 1024>}, {pipeline_mode = #tpu.pipeline_mode<synchronous>, transform_indices = @transform_1, window_bounds = array<i64: 1024, 128>}, {pipeline_mode = #tpu.pipeline_mode<synchronous>, transform_indices = @transform_2, window_bounds = array<i64: 1, 128>}, {transform_indices = @transform_3, window_bounds = array<i64: 8, 128>}]} {
    %c0 = arith.constant 0 : index
    %c0_0 = arith.constant 0 : index
    %0 = vector.load %arg1[%c0, %c0_0] : memref<8x1024xbf16, #tpu.memory_space<vmem>>, vector<8x1024xbf16>
    %c0_1 = arith.constant 0 : index
    %c0_2 = arith.constant 0 : index
    %1 = vector.load %arg2[%c0_1, %c0_2] : memref<1024x128xbf16, #tpu.memory_space<vmem>>, vector<1024x128xbf16>
    %cst = arith.constant dense<0.000000e+00> : vector<8x128xf32>
    %2 = tpu.matmul %0, %1, %cst {dimension_numbers = #tpu.dot_dimension_numbers<[1], [0], [0], [1], [0, 0, 1, 1], [], []>} : vector<8x1024xbf16>, vector<1024x128xbf16>, vector<8x128xf32> -> vector<8x128xf32>
    %c0_3 = arith.constant 0 : index
    %c0_4 = arith.constant 0 : index
    %3 = vector.load %arg3[%c0_3, %c0_4] : memref<1x128xf32, #tpu.memory_space<vmem>>, vector<1x128xf32>
    %4 = vector.broadcast %3 : vector<1x128xf32> to vector<8x128xf32>
    %5 = arith.addf %2, %4 : vector<8x128xf32>
    %c0_5 = arith.constant 0 : index
    %c0_6 = arith.constant 0 : index
    %6 = vector.load %arg4[%c0_5, %c0_6] : memref<8x128xf32, #tpu.memory_space<vmem>>, vector<8x128xf32>
    tpu.vector_store %arg4[%c0_5, %c0_6], %5 {strides = array<i32>} : memref<8x128xf32, #tpu.memory_space<vmem>>, vector<8x128xf32>,
    return
  }
  func.func @transform_0(%arg0: i32) -> (i32, i32) {
    %c0_i32 = arith.constant 0 : i32
    %c0_i32_0 = arith.constant 0 : i32
    return %arg0, %c0_i32 : i32, i32
  }
  func.func @transform_1(%arg0: i32) -> (i32, i32) {
    %c0_i32 = arith.constant 0 : i32
    %c0_i32_0 = arith.constant 0 : i32
    %c0_i32_1 = arith.constant 0 : i32
    return %c0_i32, %c0_i32_0 : i32, i32
  }
  func.func @transform_2(%arg0: i32) -> (i32, i32) {
    %c0_i32 = arith.constant 0 : i32
    %c0_i32_0 = arith.constant 0 : i32
    %c0_i32_1 = arith.constant 0 : i32
    return %c0_i32, %c0_i32_0 : i32, i32
  }
  func.func @transform_3(%arg0: i32) -> (i32, i32) {
    %c0_i32 = arith.constant 0 : i32
    %c0_i32_0 = arith.constant 0 : i32
    return %arg0, %c0_i32 : i32, i32
  }
}

</mosaic_0001>

<bundles_post_ra>
// kernel: aux_fast_rcnn_output_layers.1
= control target key start
LH: loop header
LB: loop body
LE: loop exit
PB: predicated region body
PF: predicated region fallthrough
CT: control target
= control target key end

     0   :  { %8 = vsyncpa [#allocation3], 0  ;;  %s1038_s15 = smov [#allocation2]   ;;  %s1039_s17 = smov 64   ;;  %s1082_s0 = inlined_call_operand.vmem [shape: bf16[8,1024], index: 0, kind: input, shape index: {}]   ;;  %s1083_s1 = inlined_call_operand.hbm [shape: bf16[1024,128], index: 1, kind: input, shape index: {}]   ;;  %s1084_s2 = inlined_call_operand.vmem [shape: f32[1,128], index: 2, kind: input, shape index: {}]   ;;  %s1085_s3 = inlined_call_operand.vmem [shape: f32[8,128], index: 3, kind: output, shape index: {}]  }
   0x1   :  { %s15_s14 = sshll.u32 %s1083_s1, 4  ;;  %s17_s16 = sshll.u32 %s1038_s15, 4  ;;  %s16_s14 = int_to_ptr.hbm [resolvable:$true] %s15_s14  ;;  %s18_s16 = int_to_ptr.vmem [resolvable:$true] %s17_s16 }
   0x2   :  { %s1040_s18 = smov 4  }
   0x3   :  { %23 = dma.hbm_to_vmem [thread:$0]  %s16_s14, 8192, %s18_s16, [#allocation3], %s1039_s17, %s1039_s17, %s1040_s18  }
   0x4   :  { %1036 = dma.done.wait [#allocation3], 8192  }
   0x5   :  { %1037 = vsyncadd [#allocation3], 4294959104  ;;  %v951_v0 = vld [vmem:[#allocation2 + $0x38] sm:$0xff]  ;;  %v950_v4 = vld [vmem:[#allocation2 + $0x30] sm:$0xff] }
   0x6   :  { %v959_v1 = vld [vmem:[#allocation2 + $0x78] sm:$0xff]  ;;  %578 = vmatpush.bf16.msra.mxu0 %v951_v0  ;;  %v958_v5 = vld [vmem:[#allocation2 + $0x70] sm:$0xff]  ;;  %v949_v8 = vld [vmem:[#allocation2 + $0x28] sm:$0xff] }
   0x7   :  { %v967_v2 = vld [vmem:[#allocation2 + $0xb8] sm:$0xff]  ;;  %591 = vmatpush.bf16.msra.mxu1 %v959_v1  ;;  %v966_v6 = vld [vmem:[#allocation2 + $0xb0] sm:$0xff]  ;;  %v957_v9 = vld [vmem:[#allocation2 + $0x68] sm:$0xff] }
   0x8   :  { %v975_v3 = vld [vmem:[#allocation2 + $0xf8] sm:$0xff]  ;;  %604 = vmatpush.bf16.msra.mxu2 %v967_v2  ;;  %v974_v7 = vld [vmem:[#allocation2 + $0xf0] sm:$0xff]  ;;  %v965_v10 = vld [vmem:[#allocation2 + $0xa8] sm:$0xff] }
   0x9   :  { %617 = vmatpush.bf16.msra.mxu3 %v975_v3  ;;  %v973_v11 = vld [vmem:[#allocation2 + $0xe8] sm:$0xff]  ;;  %v948_v12 = vld [vmem:[#allocation2 + $0x20] sm:$0xff]  ;;  %v947_v16 = vld [vmem:[#allocation2 + $0x18] sm:$0xff] }
   0xa   :  { %579 = vmatpush.bf16.msra.mxu0 %v950_v4  ;;  %v956_v13 = vld [vmem:[#allocation2 + $0x60] sm:$0xff]  ;;  %v955_v17 = vld [vmem:[#allocation2 + $0x58] sm:$0xff]  ;;  %v946_v20 = vld [vmem:[#allocation2 + $0x10] sm:$0xff] }
   0xb   :  { %592 = vmatpush.bf16.msra.mxu1 %v958_v5  ;;  %v964_v14 = vld [vmem:[#allocation2 + $0xa0] sm:$0xff]  ;;  %v963_v18 = vld [vmem:[#allocation2 + $0x98] sm:$0xff]  ;;  %v954_v21 = vld [vmem:[#allocation2 + $0x50] sm:$0xff] }
   0xc   :  { %605 = vmatpush.bf16.msra.mxu2 %v966_v6  ;;  %v972_v15 = vld [vmem:[#allocation2 + $0xe0] sm:$0xff]  ;;  %v971_v19 = vld [vmem:[#allocation2 + $0xd8] sm:$0xff]  ;;  %v962_v22 = vld [vmem:[#allocation2 + $0x90] sm:$0xff] }
   0xd   :  { %618 = vmatpush.bf16.msra.mxu3 %v974_v7  ;;  %v970_v23 = vld [vmem:[#allocation2 + $0xd0] sm:$0xff]  ;;  %v945_v24 = vld [vmem:[#allocation2 + $0x8] sm:$0xff]  ;;  %v30_v29 = vld [vmem:[%s1082_s0] sm:$0xff] }
   0xe   :  { %580 = vmatpush.bf16.msra.mxu0 %v949_v8  ;;  %v953_v25 = vld [vmem:[#allocation2 + $0x48] sm:$0xff]  ;;  %v944_v30 = vld [vmem:[#allocation2] sm:$0xff]  ;;  %v170_v36 = vunpack.c.l.b16 %v30_v29  ;;  %v171_v37 = vunpack.c.h.b16 %v30_v29  ;;  %v983_v38 = vld [vmem:[#allocation2 + $0x138] sm:$0xff] }
   0xf   :  { %593 = vmatpush.bf16.msra.mxu1 %v957_v9  ;;  %v961_v26 = vld [vmem:[#allocation2 + $0x88] sm:$0xff]  ;;  %v952_v31 = vld [vmem:[#allocation2 + $0x40] sm:$0xff]  ;;  %v991_v39 = vld [vmem:[#allocation2 + $0x178] sm:$0xff] }
  0x10   :  { %606 = vmatpush.bf16.msra.mxu2 %v965_v10  ;;  %v969_v27 = vld [vmem:[#allocation2 + $0xc8] sm:$0xff]  ;;  %v960_v34 = vld [vmem:[#allocation2 + $0x80] sm:$0xff]  ;;  %v999_v40 = vld [vmem:[#allocation2 + $0x1b8] sm:$0xff]  ;;  %v178_v44 = vpack.c.b16 %v170_v36, %v170_v36  ;;  %v179_v45 = vpack.c.b16 %v171_v37, %v171_v37 }
  0x11   :  { %619 = vmatpush.bf16.msra.mxu3 %v973_v11  ;;  %v31_v28 = vld [vmem:[%s1082_s0 + $0x8] sm:$0xff]  ;;  %v968_v35 = vld [vmem:[#allocation2 + $0xc0] sm:$0xff]  ;;  %v1007_v41 = vld [vmem:[#allocation2 + $0x1f8] sm:$0xff] }
  0x12   :  { %581 = vmatpush.bf16.msra.mxu0 %v948_v12  ;;  %v172_v32 = vunpack.c.l.b16 %v31_v28  ;;  %v173_v33 = vunpack.c.h.b16 %v31_v28  ;;  %v982_v46 = vld [vmem:[#allocation2 + $0x130] sm:$0xff]  ;;  %v981_v50 = vld [vmem:[#allocation2 + $0x128] sm:$0xff]  ;;  %v980_v54 = vld [vmem:[#allocation2 + $0x120] sm:$0xff] }
  0x13   :  { %594 = vmatpush.bf16.msra.mxu1 %v956_v13  ;;  %v990_v47 = vld [vmem:[#allocation2 + $0x170] sm:$0xff]  ;;  %v989_v51 = vld [vmem:[#allocation2 + $0x168] sm:$0xff]  ;;  %v988_v55 = vld [vmem:[#allocation2 + $0x160] sm:$0xff] }
  0x14   :  { %607 = vmatpush.bf16.msra.mxu2 %v964_v14  ;;  %v180_v42 = vpack.c.b16 %v172_v32, %v172_v32  ;;  %v181_v43 = vpack.c.b16 %v173_v33, %v173_v33  ;;  %v998_v48 = vld [vmem:[#allocation2 + $0x1b0] sm:$0xff]  ;;  %v997_v52 = vld [vmem:[#allocation2 + $0x1a8] sm:$0xff]  ;;  %v996_v56 = vld [vmem:[#allocation2 + $0x1a0] sm:$0xff] }
  0x15   :  { %620 = vmatpush.bf16.msra.mxu3 %v972_v15  ;;  %v1006_v49 = vld [vmem:[#allocation2 + $0x1f0] sm:$0xff]  ;;  %v1005_v53 = vld [vmem:[#allocation2 + $0x1e8] sm:$0xff]  ;;  %v1004_v57 = vld [vmem:[#allocation2 + $0x1e0] sm:$0xff] }
  0x16   :  { %582 = vmatpush.bf16.msra.mxu0 %v947_v16  ;;  %v979_v58 = vld [vmem:[#allocation2 + $0x118] sm:$0xff]  ;;  %v978_v62 = vld [vmem:[#allocation2 + $0x110] sm:$0xff]  ;;  %v977_v2 = vld [vmem:[#allocation2 + $0x108] sm:$0xff] }
  0x17   :  { %595 = vmatpush.bf16.msra.mxu1 %v955_v17  ;;  %v987_v59 = vld [vmem:[#allocation2 + $0x158] sm:$0xff]  ;;  %v986_v63 = vld [vmem:[#allocation2 + $0x150] sm:$0xff]  ;;  %v985_v3 = vld [vmem:[#allocation2 + $0x148] sm:$0xff] }
  0x18   :  { %608 = vmatpush.bf16.msra.mxu2 %v963_v18  ;;  %v995_v60 = vld [vmem:[#allocation2 + $0x198] sm:$0xff]  ;;  %v994_v0 = vld [vmem:[#allocation2 + $0x190] sm:$0xff]  ;;  %v993_v5 = vld [vmem:[#allocation2 + $0x188] sm:$0xff] }
  0x19   :  { %621 = vmatpush.bf16.msra.mxu3 %v971_v19  ;;  %v1003_v61 = vld [vmem:[#allocation2 + $0x1d8] sm:$0xff]  ;;  %v1002_v1 = vld [vmem:[#allocation2 + $0x1d0] sm:$0xff]  ;;  %v1001_v6 = vld [vmem:[#allocation2 + $0x1c8] sm:$0xff] }
  0x1a   :  { %583 = vmatpush.bf16.msra.mxu0 %v946_v20  ;;  %v32_v4 = vld [vmem:[%s1082_s0 + $0x10] sm:$0xff]  ;;  %v33_v7 = vld [vmem:[%s1082_s0 + $0x18] sm:$0xff]  ;;  %v976_v10 = vld [vmem:[#allocation2 + $0x100] sm:$0xff] }
  0x1b   :  { %596 = vmatpush.bf16.msra.mxu1 %v954_v21  ;;  %v174_v8 = vunpack.c.l.b16 %v32_v4  ;;  %v175_v9 = vunpack.c.h.b16 %v32_v4  ;;  %v984_v11 = vld [vmem:[#allocation2 + $0x140] sm:$0xff]  ;;  %v176_v12 = vunpack.c.l.b16 %v33_v7  ;;  %v177_v13 = vunpack.c.h.b16 %v33_v7 }
  0x1c   :  { %609 = vmatpush.bf16.msra.mxu2 %v962_v22  ;;  %v992_v14 = vld [vmem:[#allocation2 + $0x180] sm:$0xff] }
  0x1d   :  { %622 = vmatpush.bf16.msra.mxu3 %v970_v23  ;;  %v1000_v15 = vld [vmem:[#allocation2 + $0x1c0] sm:$0xff]  ;;  %v182_v16 = vpack.c.b16 %v174_v8, %v174_v8  ;;  %v183_v17 = vpack.c.b16 %v175_v9, %v175_v9  ;;  %v184_v18 = vpack.c.b16 %v176_v12, %v176_v12  ;;  %v185_v19 = vpack.c.b16 %v177_v13, %v177_v13 }
  0x1e   :  { %584 = vmatpush.bf16.msra.mxu0 %v945_v24 }
  0x1f   :  { %597 = vmatpush.bf16.msra.mxu1 %v953_v25 }
  0x20   :  { %610 = vmatpush.bf16.msra.mxu2 %v961_v26  ;;  %v1011_v26 = vld [vmem:[%s1084_s2] ss:$0 sm:$0xff] }
  0x21   :  { %623 = vmatpush.bf16.msra.mxu3 %v969_v27 }
  0x22   :  { %585 = vmatpush.bf16.msra.mxu0 %v944_v30 }
  0x23   :  { %598 = vmatpush.bf16.msra.mxu1 %v952_v31 }
  0x24   :  { %611 = vmatpush.bf16.msra.mxu2 %v960_v34 }
  0x25   :  { %624 = vmatpush.bf16.msra.mxu3 %v968_v35  ;;  %586 = vmatmul.bf16.vlgmr.msra.gmra.mxu0 %v178_v44 }
  0x26   :  { %630 = vmatpush.bf16.msrb.mxu0 %v983_v38  ;;  %599 = vmatmul.bf16.vlgmr.msra.gmra.mxu1 %v179_v45 }
  0x27   :  { %643 = vmatpush.bf16.msrb.mxu1 %v991_v39  ;;  %612 = vmatmul.bf16.vlgmr.msra.gmra.mxu2 %v180_v42 }
  0x28   :  { %656 = vmatpush.bf16.msrb.mxu2 %v999_v40  ;;  %625 = vmatmul.bf16.vlgmr.msra.gmra.mxu3 %v181_v43 }
  0x29   :  { %669 = vmatpush.bf16.msrb.mxu3 %v1007_v41 }
  0x2a   :  { %631 = vmatpush.bf16.msrb.mxu0 %v982_v46 }
  0x2b   :  { %644 = vmatpush.bf16.msrb.mxu1 %v990_v47 }
  0x2c   :  { %657 = vmatpush.bf16.msrb.mxu2 %v998_v48 }
  0x2d   :  { %670 = vmatpush.bf16.msrb.mxu3 %v1006_v49 }
  0x2e   :  { %632 = vmatpush.bf16.msrb.mxu0 %v981_v50 }
  0x2f   :  { %645 = vmatpush.bf16.msrb.mxu1 %v989_v51 }
  0x30   :  { %658 = vmatpush.bf16.msrb.mxu2 %v997_v52 }
  0x31   :  { %671 = vmatpush.bf16.msrb.mxu3 %v1005_v53 }
  0x32   :  { %633 = vmatpush.bf16.msrb.mxu0 %v980_v54 }
  0x33   :  { %646 = vmatpush.bf16.msrb.mxu1 %v988_v55 }
  0x34   :  { %659 = vmatpush.bf16.msrb.mxu2 %v996_v56 }
  0x35   :  { %672 = vmatpush.bf16.msrb.mxu3 %v1004_v57 }
  0x36   :  { %634 = vmatpush.bf16.msrb.mxu0 %v979_v58 }
  0x37   :  { %647 = vmatpush.bf16.msrb.mxu1 %v987_v59 }
  0x38   :  { %660 = vmatpush.bf16.msrb.mxu2 %v995_v60 }
  0x39   :  { %673 = vmatpush.bf16.msrb.mxu3 %v1003_v61 }
  0x3a   :  { %635 = vmatpush.bf16.msrb.mxu0 %v978_v62 }
  0x3b   :  { %648 = vmatpush.bf16.msrb.mxu1 %v986_v63 }
  0x3c   :  { %661 = vmatpush.bf16.msrb.mxu2 %v994_v0 }
  0x3d   :  { %674 = vmatpush.bf16.msrb.mxu3 %v1002_v1 }
  0x3e   :  { %636 = vmatpush.bf16.msrb.mxu0 %v977_v2 }
  0x3f   :  { %649 = vmatpush.bf16.msrb.mxu1 %v985_v3 }
  0x40   :  { %662 = vmatpush.bf16.msrb.mxu2 %v993_v5 }
  0x41   :  { %675 = vmatpush.bf16.msrb.mxu3 %v1001_v6 }
  0x42   :  { %637 = vmatpush.bf16.msrb.mxu0 %v976_v10 }
  0x43   :  { %650 = vmatpush.bf16.msrb.mxu1 %v984_v11 }
  0x44   :  { %663 = vmatpush.bf16.msrb.mxu2 %v992_v14 }
  0x45   :  { %676 = vmatpush.bf16.msrb.mxu3 %v1000_v15  ;;  %638 = vmatmul.bf16.vlgmr.msrb.gmra.mxu0 %v182_v16 }
  0x46   :  { %651 = vmatmul.bf16.vlgmr.msrb.gmra.mxu1 %v183_v17 }
  0x47   :  { %664 = vmatmul.bf16.vlgmr.msrb.gmra.mxu2 %v184_v18 }
  0x48   :  { %677 = vmatmul.bf16.vlgmr.msrb.gmra.mxu3 %v185_v19 }
  0xa2   :  { %v587_v20 = vpop.f32.mrf.mxu0 }
  0xa3   :  { %v600_v21 = vpop.f32.mrf.mxu1  ;;  %v588_v29 = vadd.f32 %v1011_v26, %v587_v20 }
  0xa5   :  { %v601_v30 = vadd.f32 %v600_v21, %v588_v29 }
  0xaa   :  { %v613_v22 = vpop.f32.mrf.mxu2  ;;  %v589_v24 = vpop.f32.mrf.mxu0 }
  0xab   :  { %v626_v23 = vpop.f32.mrf.mxu3  ;;  %v602_v25 = vpop.f32.mrf.mxu1  ;;  %v614_v31 = vadd.f32 %v613_v22, %v601_v30 }
  0xad   :  { %v627_v32 = vadd.f32 %v626_v23, %v614_v31 }
  0xb2   :  { %v615_v27 = vpop.f32.mrf.mxu2 }
  0xb3   :  { %v628_v28 = vpop.f32.mrf.mxu3 }
  0xc2   :  { %v639_v33 = vpop.f32.mrf.mxu0 }
  0xc3   :  { %v652_v34 = vpop.f32.mrf.mxu1  ;;  %v640_v35 = vadd.f32 %v639_v33, %v627_v32 }
  0xc5   :  { %v653_v36 = vadd.f32 %v652_v34, %v640_v35 }
  0xca   :  { %v665_v37 = vpop.f32.mrf.mxu2  ;;  %v641_v40 = vpop.f32.mrf.mxu0 }
  0xcb   :  { %v678_v38 = vpop.f32.mrf.mxu3  ;;  %v666_v39 = vadd.f32 %v665_v37, %v653_v36  ;;  %v654_v41 = vpop.f32.mrf.mxu1 }
  0xcd   :  { %v679_v42 = vadd.f32 %v678_v38, %v666_v39 }
  0xcf   :  { %682 = vst [vmem:[%s1085_s3] sm:$0xff] %v679_v42 }
  0xd2   :  { %v667_v43 = vpop.f32.mrf.mxu2 }
  0xd3   :  { %v680_v44 = vpop.f32.mrf.mxu3 }
  0xd4   :  { %687 = vsyncpa [#allocation3], 1 }

</bundles_post_ra>
